<compile_context>
chip_gen: v7x
topology: tpu7x:2x2x1
jax: 0.10.0
libtpu: 0.0.40
codegen_flags: <defaults>
</compile_context>

<pallas_src>
import jax
import jax.numpy as jnp
from jax import lax
from jax.experimental import pallas as pl
from jax.experimental.pallas import tpu as pltpu


def _round_up(x, m):
    return (x + m - 1) // m * m


# ---------------------------------------------------------------------------
# Kernel 0: B = X @ W   (small matmul, done once; B emitted in bf16 for MXU)
# ---------------------------------------------------------------------------
def _xw_kernel(x_ref, w_ref, b_ref):
    b_ref[...] = jnp.dot(
        x_ref[...], w_ref[...], preferred_element_type=jnp.float32
    ).astype(b_ref.dtype)


# ---------------------------------------------------------------------------
# Kernel 1: H = A @ B (tiled over rows x K) + per-row-tile BN partial sums
# ---------------------------------------------------------------------------
def _axb_kernel(a_ref, b_ref, h_ref, stats_ref):
    k = pl.program_id(1)

    @pl.when(k == 0)
    def _():
        h_ref[...] = jnp.zeros_like(h_ref)

    # bf16 x bf16 -> f32 accumulation in the resident output block.
    h_ref[...] += jnp.dot(
        a_ref[...], b_ref[...], preferred_element_type=jnp.float32
    )

    @pl.when(k == pl.num_programs(1) - 1)
    def _():
        h = h_ref[...]
        s1 = jnp.sum(h, axis=0, keepdims=True)        # (1, nout_p)  sum h
        s2 = jnp.sum(h * h, axis=0, keepdims=True)    # (1, nout_p)  sum h^2
        pad = jnp.zeros((6, h.shape[1]), jnp.float32)
        stats_ref[...] = jnp.concatenate([s1, s2, pad], axis=0)  # (8, nout_p)


# ---------------------------------------------------------------------------
# Kernel 2: epilogue  y = relu(h * scale + shift)
#   scale = gamma * rsqrt(var + eps);  shift = beta + bias - mean * scale
# ---------------------------------------------------------------------------
def _norm_kernel(h_ref, scale_ref, shift_ref, o_ref):
    o_ref[...] = jnp.maximum(
        h_ref[...] * scale_ref[...] + shift_ref[...], 0.0
    ).astype(o_ref.dtype)


def gcn_layer(A, X, W, bias, gamma, beta, *, tm=512, tk=1024, eps=1e-5,
              vmem_limit_bytes=32 * 1024 * 1024):
    N, nin = X.shape
    nout = W.shape[1]
    f32, bf16 = jnp.float32, jnp.bfloat16

    # Adapt tile sizes to small problems; keep (8, 128) alignment.
    tm = min(tm, _round_up(N, 8))       # row tile (sublane-aligned)
    tk = min(tk, _round_up(N, 128))     # K tile   (lane-aligned)
    np_r = _round_up(N, tm)             # padded rows of A / H / out
    np_k = _round_up(N, tk)             # padded cols of A == rows of B
    nout_p = _round_up(nout, 128)       # lane-dense feature dim
    n_row = np_r // tm
    n_k = np_k // tk

    # --- padded / casted operands (zero padding keeps matmul & BN exact) ----
    A_p = jnp.zeros((np_r, np_k), bf16).at[:N, :N].set(A.astype(bf16))
    X_p = jnp.zeros((np_k, nin), f32).at[:N, :].set(X.astype(f32))
    W_p = jnp.zeros((nin, nout_p), f32).at[:, :nout].set(W.astype(f32))
    gamma_p = jnp.zeros((1, nout_p), f32).at[:, :nout].set(gamma.astype(f32))
    beta_p = jnp.zeros((1, nout_p), f32).at[:, :nout].set(beta.astype(f32))
    bias_p = jnp.zeros((1, nout_p), f32).at[:, :nout].set(bias.astype(f32))

    # --- kernel 0: B = X @ W ------------------------------------------------
    B = pl.pallas_call(
        _xw_kernel,
        out_shape=jax.ShapeDtypeStruct((np_k, nout_p), bf16),
        grid=(n_k,),
        in_specs=[pl.BlockSpec((tk, nin), lambda i: (i, 0)),
                  pl.BlockSpec((nin, nout_p), lambda i: (0, 0))],
        out_specs=pl.BlockSpec((tk, nout_p), lambda i: (i, 0)),
        compiler_params=pltpu.CompilerParams(
            dimension_semantics=("parallel",),
            vmem_limit_bytes=vmem_limit_bytes),
    )(X_p, W_p)

    # --- kernel 1: H = A @ B and per-row-tile partial sums ------------------
    cost = pl.CostEstimate(
        flops=2 * np_r * np_k * nout_p,
        transcendentals=0,
        bytes_accessed=(A_p.size * 2 + B.size * 2
                        + np_r * nout_p * 4 + n_row * 8 * nout_p * 4),
    )
    H, stats = pl.pallas_call(
        _axb_kernel,
        out_shape=(jax.ShapeDtypeStruct((np_r, nout_p), f32),
                   jax.ShapeDtypeStruct((n_row * 8, nout_p), f32)),
        grid=(n_row, n_k),
        in_specs=[pl.BlockSpec((tm, tk), lambda i, k: (i, k)),
                  pl.BlockSpec((tk, nout_p), lambda i, k: (k, 0))],
        out_specs=(pl.BlockSpec((tm, nout_p), lambda i, k: (i, 0)),
                   pl.BlockSpec((8, nout_p), lambda i, k: (i, 0))),
        compiler_params=pltpu.CompilerParams(
            dimension_semantics=("parallel", "arbitrary"),
            vmem_limit_bytes=vmem_limit_bytes),
        cost_estimate=cost,
    )(A_p, B)

    # --- global BatchNorm statistics over the true N rows (tiny reduce) -----
    # Padded rows of A are zero -> their H rows are zero -> contribute 0 to
    # the sums, so dividing by the true N is exact.
    stats = stats.reshape(n_row, 8, nout_p)
    s1 = jnp.sum(stats[:, 0, :], axis=0, keepdims=True)      # (1, nout_p)
    s2 = jnp.sum(stats[:, 1, :], axis=0, keepdims=True)
    mean = s1 / N
    var = jnp.maximum(s2 / N - mean * mean, 0.0)              # biased variance
    scale = gamma_p * lax.rsqrt(var + eps)
    shift = beta_p + bias_p - mean * scale                    # bias folded in

    # --- kernel 2: y = relu(h * scale + shift) ------------------------------
    out_p = pl.pallas_call(
        _norm_kernel,
        out_shape=jax.ShapeDtypeStruct((np_r, nout_p), f32),
        grid=(n_row,),
        in_specs=[pl.BlockSpec((tm, nout_p), lambda i: (i, 0)),
                  pl.BlockSpec((1, nout_p), lambda i: (0, 0)),
                  pl.BlockSpec((1, nout_p), lambda i: (0, 0))],
        out_specs=pl.BlockSpec((tm, nout_p), lambda i: (i, 0)),
        compiler_params=pltpu.CompilerParams(
            dimension_semantics=("parallel",),
            vmem_limit_bytes=vmem_limit_bytes),
    )(H, scale, shift)

    return out_p[:N, :nout]


if __name__ == "__main__":
    key = jax.random.PRNGKey(0)
    k_a, k_x, k_w = jax.random.split(key, 3)

    N, nin, nout = 64, 32, 32

    # Deterministic synthetic inputs / parameters.
    # Row-normalized random adjacency with self loops.
    A_raw = (jax.random.uniform(k_a, (N, N)) < 0.2).astype(jnp.float32)
    A_raw = A_raw + jnp.eye(N, dtype=jnp.float32)
    A = A_raw / jnp.sum(A_raw, axis=1, keepdims=True)

    X = jax.random.normal(k_x, (N, nin), dtype=jnp.float32)

    # Xavier-uniform init for W (reset_parameters0); bias filled with 0.
    bound = (6.0 / (nin + nout)) ** 0.5
    W = jax.random.uniform(k_w, (nin, nout), minval=-bound, maxval=bound,
                           dtype=jnp.float32)
    bias = jnp.zeros((1, nout), dtype=jnp.float32)
    # BatchNorm1d affine params: gamma=1, beta=0 (fresh-module defaults).
    gamma = jnp.ones((1, nout), dtype=jnp.float32)
    beta = jnp.zeros((1, nout), dtype=jnp.float32)

    # dropout=0.0 in __init__ -> `if self.dropout:` is False -> no dropout op.

    out = gcn_layer(A, X, W, bias, gamma, beta)
    jax.block_until_ready(out)

    # Pure-JAX reference mirroring the kernel's mixed-precision policy
    # (A and B = X @ W fed to the MXU as bf16, accumulation in f32).
    B_ref = (X @ W).astype(jnp.bfloat16).astype(jnp.float32)
    A_bf = A.astype(jnp.bfloat16).astype(jnp.float32)
    h_ref = A_bf @ B_ref
    mu = jnp.mean(h_ref, axis=0, keepdims=True)
    vr = jnp.mean((h_ref - mu) ** 2, axis=0, keepdims=True)
    h_ref = (h_ref - mu) / jnp.sqrt(vr + 1e-5) * gamma + beta
    h_ref = jnp.maximum(h_ref + bias, 0.0)

    assert out.shape == (N, nout)
    err = float(jnp.max(jnp.abs(out - h_ref)))
    assert jnp.allclose(out, h_ref, atol=1e-2, rtol=1e-2), err

    print("KERNEL_OK")
</pallas_src>

<mosaic_0001>
module attributes {stable_mosaic.version = 11 : i64} {
  func.func @_xw_kernel(%arg0: i32, %arg1: memref<128x32xf32, #tpu.memory_space<vmem>>, %arg2: memref<32x128xf32, #tpu.memory_space<vmem>>, %arg3: memref<128x128xbf16, #tpu.memory_space<vmem>>) attributes {dimension_semantics = [#tpu.dimension_semantics<parallel>], iteration_bounds = array<i64: 1>, scalar_prefetch = 0 : i64, scratch_operands = 0 : i64, tpu.core_type = #tpu.core_type<tc>, window_params = [{transform_indices = @transform_0, window_bounds = array<i64: 128, 32>}, {pipeline_mode = #tpu.pipeline_mode<synchronous>, transform_indices = @transform_1, window_bounds = array<i64: 32, 128>}, {transform_indices = @transform_2, window_bounds = array<i64: 128, 128>}]} {
    %c0 = arith.constant 0 : index
    %c0_0 = arith.constant 0 : index
    %0 = vector.load %arg1[%c0, %c0_0] : memref<128x32xf32, #tpu.memory_space<vmem>>, vector<128x32xf32>
    %c0_1 = arith.constant 0 : index
    %c0_2 = arith.constant 0 : index
    %1 = vector.load %arg2[%c0_1, %c0_2] : memref<32x128xf32, #tpu.memory_space<vmem>>, vector<32x128xf32>
    %cst = arith.constant dense<0.000000e+00> : vector<128x128xf32>
    %2 = tpu.matmul %0, %1, %cst {dimension_numbers = #tpu.dot_dimension_numbers<[1], [0], [0], [1], [0, 0, 1, 1], [], []>} : vector<128x32xf32>, vector<32x128xf32>, vector<128x128xf32> -> vector<128x128xf32>
    %3 = arith.truncf %2 : vector<128x128xf32> to vector<128x128xbf16>
    %c0_3 = arith.constant 0 : index
    %c0_4 = arith.constant 0 : index
    %4 = vector.load %arg3[%c0_3, %c0_4] : memref<128x128xbf16, #tpu.memory_space<vmem>>, vector<128x128xbf16>
    tpu.vector_store %arg3[%c0_3, %c0_4], %3 {strides = array<i32>} : memref<128x128xbf16, #tpu.memory_space<vmem>>, vector<128x128xbf16>,
    return
  }
  func.func @transform_0(%arg0: i32) -> (i32, i32) {
    %c0_i32 = arith.constant 0 : i32
    %c0_i32_0 = arith.constant 0 : i32
    return %arg0, %c0_i32 : i32, i32
  }
  func.func @transform_1(%arg0: i32) -> (i32, i32) {
    %c0_i32 = arith.constant 0 : i32
    %c0_i32_0 = arith.constant 0 : i32
    %c0_i32_1 = arith.constant 0 : i32
    return %c0_i32, %c0_i32_0 : i32, i32
  }
  func.func @transform_2(%arg0: i32) -> (i32, i32) {
    %c0_i32 = arith.constant 0 : i32
    %c0_i32_0 = arith.constant 0 : i32
    return %arg0, %c0_i32 : i32, i32
  }
}

</mosaic_0001>

<bundles_post_ra>
// kernel: tpu_custom_call.1
= control target key start
LH: loop header
LB: loop body
LE: loop exit
PB: predicated region body
PF: predicated region fallthrough
CT: control target
= control target key end

     0   :  { %vm32_vm0 = vcmask 261120   ;;  %s614_s0 = inlined_call_operand.vmem [shape: f32[128,32], index: 0, kind: input, shape index: {}]   ;;  %s615_s1 = inlined_call_operand.vmem [shape: f32[32,128], index: 1, kind: input, shape index: {}]   ;;  %s616_s2 = inlined_call_operand.hbm [shape: bf16[128,128], index: 2, kind: output, shape index: {}]  }
   0x1   :  { %v28_v0 = vld [vmem:[%s615_s1] sm:$0xff]  ;;  %v29_v1 = vld [vmem:[%s615_s1 + $0x8] sm:$0xff]  ;;  %v30_v2 = vld [vmem:[%s615_s1 + $0x10] sm:$0xff] }
   0x2   :  { %v469_v3 = vpack.c.bf16 %v29_v1, %v28_v0  ;;  %v31_v4 = vld [vmem:[%s615_s1 + $0x18] sm:$0xff]  ;;  %v12_v5 = vld [vmem:[%s614_s0] sm:$0xff] }
   0x3   :  { %v20_v6 = vld [vmem:[%s614_s0 + $0x40] sm:$0xff]  ;;  %v473_v7 = vpack.c.bf16 %v31_v4, %v30_v2  ;;  %445 = vmatprep.mubr.msk.f32.mxu0 %vm32_vm0, %v12_v5 }
   0x4   :  { %457 = vmatprep.mubr.msk.f32.mxu1 %vm32_vm0, %v20_v6  ;;  %470 = vmatprep.subr.bf16.mxu0 %v469_v3 }
   0x5   :  { %477 = vmatprep.subr.bf16.mxu1 %v469_v3  ;;  %472 = vmatpush3.bf16.msra.mxu0 %v469_v3 }
   0x6   :  { %479 = vmatpush3.bf16.msra.mxu1 %v469_v3  ;;  %474 = vmatprep.subr.bf16.mxu0 %v473_v7 }
   0x7   :  { %478 = vmatprep.subr.bf16.mxu1 %v473_v7 }
   0x8   :  { %7 = vsyncpa [#allocation3], 0  ;;  %v13_v8 = vld [vmem:[%s614_s0 + $0x8] sm:$0xff]  ;;  %v14_v10 = vld [vmem:[%s614_s0 + $0x10] sm:$0xff] }
   0x9   :  { %476 = vmatpush3.bf16.msra.mxu0 %v473_v7  ;;  %v21_v9 = vld [vmem:[%s614_s0 + $0x48] sm:$0xff]  ;;  %v22_v11 = vld [vmem:[%s614_s0 + $0x50] sm:$0xff]  ;;  %v15_v12 = vld [vmem:[%s614_s0 + $0x18] sm:$0xff] }
   0xa   :  { %480 = vmatpush3.bf16.msra.mxu1 %v473_v7  ;;  %v23_v13 = vld [vmem:[%s614_s0 + $0x58] sm:$0xff]  ;;  %v16_v14 = vld [vmem:[%s614_s0 + $0x20] sm:$0xff]  ;;  %v17_v16 = vld [vmem:[%s614_s0 + $0x28] sm:$0xff] }
   0xb   :  { %v24_v15 = vld [vmem:[%s614_s0 + $0x60] sm:$0xff]  ;;  %v25_v17 = vld [vmem:[%s614_s0 + $0x68] sm:$0xff]  ;;  %v18_v18 = vld [vmem:[%s614_s0 + $0x30] sm:$0xff] }
   0xc   :  { %446 = vmatmul.mubr.msk.f32.vlgmr.msra.gmra.mrb[0].mxu0 %vm32_vm0, %v13_v8  ;;  %v26_v19 = vld [vmem:[%s614_s0 + $0x70] sm:$0xff]  ;;  %v19_v20 = vld [vmem:[%s614_s0 + $0x38] sm:$0xff] }
   0xd   :  { %458 = vmatmul.mubr.msk.f32.vlgmr.msra.gmra.mrb[0].mxu1 %vm32_vm0, %v21_v9  ;;  %448 = vmatprep.mubr.msk.f32.mxu0 %vm32_vm0, %v14_v10  ;;  %v27_v21 = vld [vmem:[%s614_s0 + $0x78] sm:$0xff]  ;;  %s508_s0 = smov [#allocation2]  }
   0xe   :  { %460 = vmatprep.mubr.msk.f32.mxu1 %vm32_vm0, %v22_v11  ;;  %s311_s20 = sshll.u32 %s508_s0, 4  ;;  %s312_s20 = int_to_ptr.vmem [resolvable:$true] %s311_s20 }
   0xf   :  { %s484_s1 = scalar_lea.vmem %s312_s20, 1024  ;;  %p489_p1 = scmp.lt.s32.totalorder %s312_s20, %s312_s20 }
  0x10   :  { %449 = vmatmul.mubr.msk.f32.gmra.mrb[2].mxu0 %vm32_vm0, %v15_v12  ;;  %p485_p0 = scmp.ne.s32.totalorder %s312_s20, %s484_s1  ;;  %p490_p2 = scmp.lt.s32.totalorder %s484_s1, %s484_s1 }
  0x11   :  { %461 = vmatmul.mubr.msk.f32.gmra.mrb[2].mxu1 %vm32_vm0, %v23_v13  ;;  %451 = vmatprep.mubr.msk.f32.mxu0 %vm32_vm0, %v16_v14 }
  0x12   :  { %463 = vmatprep.mubr.msk.f32.mxu1 %vm32_vm0, %v24_v15  ;;  %p491_p3 = por %p490_p2, %p489_p1 }
  0x14   :  { %452 = vmatmul.mubr.msk.f32.gmra.mrb[4].mxu0 %vm32_vm0, %v17_v16  ;;  %p492_p4 = pnand %p491_p3, %p485_p0 }
  0x15   :  { %464 = vmatmul.mubr.msk.f32.gmra.mrb[4].mxu1 %vm32_vm0, %v25_v17  ;;  %454 = vmatprep.mubr.msk.f32.mxu0 %vm32_vm0, %v18_v18 }
  0x16   :  { %466 = vmatprep.mubr.msk.f32.mxu1 %vm32_vm0, %v26_v19 }
  0x18   :  { %455 = vmatmul.mubr.msk.f32.gmra.mrb[6].mxu0 %vm32_vm0, %v19_v20 }
  0x19   :  { %467 = vmatmul.mubr.msk.f32.gmra.mrb[6].mxu1 %vm32_vm0, %v27_v21 }
  0xdf   :  { %v447_v22 = vpop.f32.mrb[0].mxu0 }
  0xe0   :  { %v459_v23 = vpop.f32.mrb[0].mxu1  ;;  %v147_v24 = vpop.f32.mrb[1].mxu0 }
  0xe1   :  { %v187_v25 = vpop.f32.mrb[1].mxu1  ;;  %v373_v26 = vpack.c.bf16 %v447_v22, %v147_v24 }
  0xe2   :  { %v393_v27 = vpack.c.bf16 %v459_v23, %v187_v25 }
  0xe3   :  { %374 = vst [vmem:[#allocation2] sm:$0xff] %v373_v26   ;;  %v450_v28 = vpop.f32.mrb[2].mxu0 }
  0xe4   :  { %413 = vst [vmem:[#allocation2 + $0x20] sm:$0xff] %v393_v27   ;;  %v462_v29 = vpop.f32.mrb[2].mxu1  ;;  %v157_v30 = vpop.f32.mrb[3].mxu0 }
  0xe5   :  { %v197_v31 = vpop.f32.mrb[3].mxu1  ;;  %v378_v32 = vpack.c.bf16 %v450_v28, %v157_v30 }
  0xe6   :  { %v398_v33 = vpack.c.bf16 %v462_v29, %v197_v31 }
  0xe7   :  { %410 = vst [vmem:[#allocation2 + $0x8] sm:$0xff] %v378_v32   ;;  %v453_v34 = vpop.f32.mrb[4].mxu0 }
  0xe8   :  { %414 = vst [vmem:[#allocation2 + $0x28] sm:$0xff] %v398_v33   ;;  %v465_v35 = vpop.f32.mrb[4].mxu1  ;;  %v167_v36 = vpop.f32.mrb[5].mxu0 }
  0xe9   :  { %v207_v37 = vpop.f32.mrb[5].mxu1  ;;  %v383_v38 = vpack.c.bf16 %v453_v34, %v167_v36 }
  0xea   :  { %v403_v39 = vpack.c.bf16 %v465_v35, %v207_v37 }
  0xeb   :  { %411 = vst [vmem:[#allocation2 + $0x10] sm:$0xff] %v383_v38   ;;  %v456_v40 = vpop.f32.mrb[6].mxu0 }
  0xec   :  { %415 = vst [vmem:[#allocation2 + $0x30] sm:$0xff] %v403_v39   ;;  %v468_v41 = vpop.f32.mrb[6].mxu1  ;;  %v177_v42 = vpop.f32.mrb[7].mxu0 }
  0xed   :  { %v217_v43 = vpop.f32.mrb[7].mxu1  ;;  %v388_v44 = vpack.c.bf16 %v456_v40, %v177_v42 }
  0xee   :  { %v408_v45 = vpack.c.bf16 %v468_v41, %v217_v43 }
  0xef   :  { %412 = vst [vmem:[#allocation2 + $0x18] sm:$0xff] %v388_v44  }
  0xf0   :  { %416 = vst [vmem:[#allocation2 + $0x38] sm:$0xff] %v408_v45  }
  0xf1   :  { %495 = shalt.err (!%p492_p4)
}
  0xf2   :  { %s496_s23 = scalar_lea.hbm %s616_s2, 1024 }
  0xf3   :  { %p497_p5 = scmp.ne.s32.totalorder %s616_s2, %s496_s23  ;;  %p500_p6 = scmp.lt.u32.totalorder %s496_s23, %s616_s2 }
  0xf5   :  { %p502_p7 = pnand %p500_p6, %p497_p5 }
  0xf7   :  { %505 = shalt.err (!%p502_p7)
}
  0xf8   :  { %s509_s28 = smov 64   ;;  %s510_s29 = smov 4  }
  0xf9   :  { %317 = dma.vmem_to_hbm [thread:$0]  %s312_s20, 1024, %s616_s2, [#allocation3], %s509_s28, %s509_s28, %s510_s29  }
  0xfa   :  { %506 = dma.done.wait [#allocation3], 1024  }
  0xfb   :  { %507 = vsyncadd [#allocation3], 4294966272 }
  0xfc   :  { %321 = vsyncpa [#allocation3], 1 }

</bundles_post_ra>
